<compile_context>
chip_gen: v7x
topology: tpu7x:2x2x1
jax: 0.10.0
libtpu: 0.0.40
codegen_flags: <defaults>
</compile_context>

<pallas_src>
import jax
import jax.numpy as jnp
from jax.experimental import pallas as pl
from jax.experimental.pallas import tpu as pltpu


def _make_kernel(H, W, C, F):
    HW = H * W

    def kernel(w2_ref, watt_ref, wsum_ref, wtap_ref, x_ref, o_ref):
        # w2_ref  : SMEM (1,)     spatial 1x1 conv weight (scalar)
        # watt_ref: SMEM (C*F,)   attention 1x1 weights, row-major [c, f]
        # wsum_ref: SMEM (F,)     per-output-channel column sums of w_att
        # wtap_ref: VMEM (9, HW)  3x3 tap weights, pre-masked per flat position
        # x_ref   : VMEM (bt, C*HW)
        # o_ref   : VMEM (bt, F*HW)
        x = x_ref[...].astype(jnp.float32)                    # (bt, C*HW)
        xc = [x[:, c * HW:(c + 1) * HW] for c in range(C)]    # lane-aligned views

        # ---- channel mean --------------------------------------------------
        g = xc[0]
        for c in range(1, C):
            g = g + xc[c]
        g = g * jnp.float32(1.0 / C)                           # (bt, HW)

        # ---- 3x3 conv, padding=1, no bias: 9 lane rolls x pre-masked taps ---
        conv = g * wtap_ref[4:5, :]                            # center tap
        for di in (-1, 0, 1):
            for dj in (-1, 0, 1):
                if di == 0 and dj == 0:
                    continue
                k = (di + 1) * 3 + (dj + 1)
                # shifted[p] == g[p + di*W + dj]; wrap/edge taps are zeroed by
                # the pre-masked per-position weight plane.
                shift = (-(di * W + dj)) % HW
                shifted = pltpu.roll(g, shift=shift, axis=1)
                conv = conv + shifted * wtap_ref[k:k + 1, :]

        # ---- ReLU -> 1x1 conv (scalar weight) -> sigmoid ---------------------
        s = jax.nn.sigmoid(jnp.maximum(conv, jnp.float32(0.0)) * w2_ref[0])

        # ---- attention 1x1 C->F on (x + s), stored channel-by-channel --------
        #   sum_c w[c,f]*(x_c + s) == sum_c w[c,f]*x_c + (sum_c w[c,f]) * s
        for f in range(F):
            acc = s * wsum_ref[f]
            for c in range(C):
                acc = acc + xc[c] * watt_ref[c * F + f]
            o_ref[:, f * HW:(f + 1) * HW] = jax.nn.sigmoid(acc).astype(o_ref.dtype)

    return kernel


def _masked_tap_planes(w1_3x3, H, W):
    """(9, H*W) f32: tap weight where the tap is inside the image, else 0."""
    HW = H * W
    pos = jnp.arange(HW, dtype=jnp.int32)
    row = pos // W
    col = pos % W
    w = w1_3x3.reshape(9).astype(jnp.float32)
    planes = []
    for di in (-1, 0, 1):
        for dj in (-1, 0, 1):
            valid = ((row + di >= 0) & (row + di <= H - 1) &
                     (col + dj >= 0) & (col + dj <= W - 1))
            planes.append(jnp.where(valid, w[(di + 1) * 3 + (dj + 1)],
                                    jnp.float32(0.0)))
    return jnp.stack(planes, axis=0)


def _pick_bt(B, bytes_per_image, budget=4 << 20):
    """Images per grid step; combined x+out block targeted at ~`budget` bytes."""
    max_bt = max(1, budget // bytes_per_image)
    if max_bt >= B:
        if B >= 16:
            # Split into >=2 'parallel' steps (dual-TC v7x / megacore), bt % 8 == 0.
            return max(8, (((B + 1) // 2) // 8) * 8)
        return B                      # one step; block equals the full batch dim
    if max_bt >= 8:
        return (max_bt // 8) * 8      # sublane-aligned packing under the budget
    # TODO(synk): single image exceeds the block budget — tile H into the grid
    # with a 1-row halo for the 3x3 conv instead of batch packing.
    return int(max_bt)


def scale_spatial_attention(x_nchw, w1_3x3, w2, w_att):
    """x_nchw: (B,C,H,W) float; w1_3x3: (3,3); w2: (1,); w_att: (C,F) -> (B,F,H,W).

    Note: if H*W is not a multiple of 128 the kernel stays correct (blocks span
    the full flattened spatial dim) but channel slices / stores become masked.
    """
    B, C, H, W = x_nchw.shape
    F = w_att.shape[1]
    HW = H * W
    x_dtype = x_nchw.dtype

    # Trailing-dim collapse only — no transpose, no data movement.
    x_flat = x_nchw.reshape(B, C * HW)

    itemsize = jnp.dtype(x_dtype).itemsize
    bytes_per_image = (C + F) * HW * itemsize
    bt = _pick_bt(B, bytes_per_image)
    B_pad = -(-B // bt) * bt
    if B_pad != B:
        x_flat = jnp.pad(x_flat, ((0, B_pad - B), (0, 0)))
    grid = (B_pad // bt,)

    # Tiny weights → SMEM via scalar prefetch; pre-masked 3x3 tap planes → VMEM.
    w2_flat = jnp.asarray(w2, jnp.float32).reshape(1)
    watt_f32 = jnp.asarray(w_att, jnp.float32)
    watt_flat = watt_f32.reshape(C * F)
    wsum = watt_f32.sum(axis=0)                     # (F,)
    wtap = _masked_tap_planes(w1_3x3, H, W)         # (9, HW)

    kernel = _make_kernel(H, W, C, F)

    out_flat = pl.pallas_call(
        kernel,
        out_shape=jax.ShapeDtypeStruct((B_pad, F * HW), x_dtype),
        grid_spec=pltpu.PrefetchScalarGridSpec(
            num_scalar_prefetch=3,
            grid=grid,
            in_specs=[
                pl.BlockSpec((9, HW), lambda b, w2r, war, wsr: (0, 0)),        # wtap
                pl.BlockSpec((bt, C * HW), lambda b, w2r, war, wsr: (b, 0)),   # x
            ],
            out_specs=pl.BlockSpec((bt, F * HW), lambda b, w2r, war, wsr: (b, 0)),
        ),
        compiler_params=pltpu.CompilerParams(
            dimension_semantics=("parallel",),
            vmem_limit_bytes=32 * 1024 * 1024,
        ),
    )(w2_flat, watt_flat, wsum, wtap, x_flat)

    return out_flat[:B].reshape(B, F, H, W)         # NCHW


def ref_forward(x, w1_2d, w2, w_att):
    """Pure-JAX reference matching the PyTorch forward (NCHW)."""
    g = jnp.mean(x, axis=1, keepdims=True)                           # (B,1,H,W)
    conv1 = jax.lax.conv_general_dilated(
        g, w1_2d.reshape(1, 1, 3, 3), window_strides=(1, 1),
        padding=((1, 1), (1, 1)),
        dimension_numbers=("NCHW", "OIHW", "NCHW"),
        precision=jax.lax.Precision.HIGHEST)
    s = jax.nn.sigmoid(jnp.maximum(conv1, 0.0) * w2[0])
    gx = s + x
    att = jnp.einsum("bchw,cf->bfhw", gx, w_att,
                     precision=jax.lax.Precision.HIGHEST)
    return jax.nn.sigmoid(att)


if __name__ == "__main__":
    B, C, H, W, F = 2, 4, 16, 16, 8      # in_planes=4, num_features=8

    key = jax.random.PRNGKey(0)
    k1, k2, k3, kx = jax.random.split(key, 4)

    # Deterministic kaiming_normal_(mode='fan_out', nonlinearity='relu') equivalents
    w1 = jax.random.normal(k1, (3, 3), jnp.float32) * jnp.sqrt(2.0 / 9.0)   # fan_out = 1*3*3
    w2 = jax.random.normal(k2, (1,), jnp.float32) * jnp.sqrt(2.0)           # fan_out = 1*1*1
    w_att = jax.random.normal(k3, (C, F), jnp.float32) * jnp.sqrt(2.0 / F)  # fan_out = F*1*1

    x = jax.random.normal(kx, (B, C, H, W), jnp.float32)

    out = jax.block_until_ready(scale_spatial_attention(x, w1, w2, w_att))
    ref = jax.block_until_ready(ref_forward(x, w1, w2, w_att))

    assert out.shape == (B, F, H, W)
    max_err = float(jnp.max(jnp.abs(out - ref)))
    assert jnp.allclose(out, ref, atol=1e-5, rtol=1e-5), max_err

    print("KERNEL_OK")
</pallas_src>

<mosaic_0001>
module attributes {stable_mosaic.version = 11 : i64} {
  func.func @kernel(%arg0: i32, %arg1: memref<1xf32, #tpu.memory_space<smem>>, %arg2: memref<32xf32, #tpu.memory_space<smem>>, %arg3: memref<8xf32, #tpu.memory_space<smem>>, %arg4: memref<9x256xf32, #tpu.memory_space<vmem>>, %arg5: memref<2x1024xf32, #tpu.memory_space<vmem>>, %arg6: memref<2x2048xf32, #tpu.memory_space<vmem>>) attributes {dimension_semantics = [#tpu.dimension_semantics<parallel>], iteration_bounds = array<i64: 1>, scalar_prefetch = 3 : i64, scratch_operands = 0 : i64, tpu.core_type = #tpu.core_type<tc>, window_params = [{pipeline_mode = #tpu.pipeline_mode<synchronous>, transform_indices = @transform_0, window_bounds = array<i64: 9, 256>}, {transform_indices = @transform_1, window_bounds = array<i64: 2, 1024>}, {transform_indices = @transform_2, window_bounds = array<i64: 2, 2048>}]} {
    %c0 = arith.constant 0 : index
    %c0_0 = arith.constant 0 : index
    %0 = vector.load %arg5[%c0, %c0_0] : memref<2x1024xf32, #tpu.memory_space<vmem>>, vector<2x1024xf32>
    %1 = vector.extract_strided_slice %0 {offsets = [0, 0], sizes = [2, 256], strides = [1, 1]} : vector<2x1024xf32> to vector<2x256xf32>
    %2 = vector.extract_strided_slice %0 {offsets = [0, 256], sizes = [2, 256], strides = [1, 1]} : vector<2x1024xf32> to vector<2x256xf32>
    %3 = vector.extract_strided_slice %0 {offsets = [0, 512], sizes = [2, 256], strides = [1, 1]} : vector<2x1024xf32> to vector<2x256xf32>
    %4 = vector.extract_strided_slice %0 {offsets = [0, 768], sizes = [2, 256], strides = [1, 1]} : vector<2x1024xf32> to vector<2x256xf32>
    %5 = arith.addf %1, %2 : vector<2x256xf32>
    %6 = arith.addf %5, %3 : vector<2x256xf32>
    %7 = arith.addf %6, %4 : vector<2x256xf32>
    %cst = arith.constant 2.500000e-01 : f32
    %8 = vector.broadcast %cst : f32 to vector<2x256xf32>
    %9 = arith.mulf %7, %8 : vector<2x256xf32>
    %c4 = arith.constant 4 : index
    %c0_1 = arith.constant 0 : index
    %10 = vector.load %arg4[%c4, %c0_1] : memref<9x256xf32, #tpu.memory_space<vmem>>, vector<1x256xf32>
    %11 = vector.broadcast %10 : vector<1x256xf32> to vector<2x256xf32>
    %12 = arith.mulf %9, %11 : vector<2x256xf32>
    %c17_i32 = arith.constant 17 : i32
    %13 = tpu.dynamic_rotate %9 by %c17_i32 dim 1 : vector<2x256xf32>, i32 -> vector<2x256xf32>
    %c0_2 = arith.constant 0 : index
    %c0_3 = arith.constant 0 : index
    %14 = vector.load %arg4[%c0_2, %c0_3] : memref<9x256xf32, #tpu.memory_space<vmem>>, vector<1x256xf32>
    %15 = vector.broadcast %14 : vector<1x256xf32> to vector<2x256xf32>
    %16 = arith.mulf %13, %15 : vector<2x256xf32>
    %17 = arith.addf %12, %16 : vector<2x256xf32>
    %c16_i32 = arith.constant 16 : i32
    %18 = tpu.dynamic_rotate %9 by %c16_i32 dim 1 : vector<2x256xf32>, i32 -> vector<2x256xf32>
    %c1 = arith.constant 1 : index
    %c0_4 = arith.constant 0 : index
    %19 = vector.load %arg4[%c1, %c0_4] : memref<9x256xf32, #tpu.memory_space<vmem>>, vector<1x256xf32>
    %20 = vector.broadcast %19 : vector<1x256xf32> to vector<2x256xf32>
    %21 = arith.mulf %18, %20 : vector<2x256xf32>
    %22 = arith.addf %17, %21 : vector<2x256xf32>
    %c15_i32 = arith.constant 15 : i32
    %23 = tpu.dynamic_rotate %9 by %c15_i32 dim 1 : vector<2x256xf32>, i32 -> vector<2x256xf32>
    %c2 = arith.constant 2 : index
    %c0_5 = arith.constant 0 : index
    %24 = vector.load %arg4[%c2, %c0_5] : memref<9x256xf32, #tpu.memory_space<vmem>>, vector<1x256xf32>
    %25 = vector.broadcast %24 : vector<1x256xf32> to vector<2x256xf32>
    %26 = arith.mulf %23, %25 : vector<2x256xf32>
    %27 = arith.addf %22, %26 : vector<2x256xf32>
    %c1_i32 = arith.constant 1 : i32
    %28 = tpu.dynamic_rotate %9 by %c1_i32 dim 1 : vector<2x256xf32>, i32 -> vector<2x256xf32>
    %c3 = arith.constant 3 : index
    %c0_6 = arith.constant 0 : index
    %29 = vector.load %arg4[%c3, %c0_6] : memref<9x256xf32, #tpu.memory_space<vmem>>, vector<1x256xf32>
    %30 = vector.broadcast %29 : vector<1x256xf32> to vector<2x256xf32>
    %31 = arith.mulf %28, %30 : vector<2x256xf32>
    %32 = arith.addf %27, %31 : vector<2x256xf32>
    %c255_i32 = arith.constant 255 : i32
    %33 = tpu.dynamic_rotate %9 by %c255_i32 dim 1 : vector<2x256xf32>, i32 -> vector<2x256xf32>
    %c5 = arith.constant 5 : index
    %c0_7 = arith.constant 0 : index
    %34 = vector.load %arg4[%c5, %c0_7] : memref<9x256xf32, #tpu.memory_space<vmem>>, vector<1x256xf32>
    %35 = vector.broadcast %34 : vector<1x256xf32> to vector<2x256xf32>
    %36 = arith.mulf %33, %35 : vector<2x256xf32>
    %37 = arith.addf %32, %36 : vector<2x256xf32>
    %c241_i32 = arith.constant 241 : i32
    %38 = tpu.dynamic_rotate %9 by %c241_i32 dim 1 : vector<2x256xf32>, i32 -> vector<2x256xf32>
    %c6 = arith.constant 6 : index
    %c0_8 = arith.constant 0 : index
    %39 = vector.load %arg4[%c6, %c0_8] : memref<9x256xf32, #tpu.memory_space<vmem>>, vector<1x256xf32>
    %40 = vector.broadcast %39 : vector<1x256xf32> to vector<2x256xf32>
    %41 = arith.mulf %38, %40 : vector<2x256xf32>
    %42 = arith.addf %37, %41 : vector<2x256xf32>
    %c240_i32 = arith.constant 240 : i32
    %43 = tpu.dynamic_rotate %9 by %c240_i32 dim 1 : vector<2x256xf32>, i32 -> vector<2x256xf32>
    %c7 = arith.constant 7 : index
    %c0_9 = arith.constant 0 : index
    %44 = vector.load %arg4[%c7, %c0_9] : memref<9x256xf32, #tpu.memory_space<vmem>>, vector<1x256xf32>
    %45 = vector.broadcast %44 : vector<1x256xf32> to vector<2x256xf32>
    %46 = arith.mulf %43, %45 : vector<2x256xf32>
    %47 = arith.addf %42, %46 : vector<2x256xf32>
    %c239_i32 = arith.constant 239 : i32
    %48 = tpu.dynamic_rotate %9 by %c239_i32 dim 1 : vector<2x256xf32>, i32 -> vector<2x256xf32>
    %c8 = arith.constant 8 : index
    %c0_10 = arith.constant 0 : index
    %49 = vector.load %arg4[%c8, %c0_10] : memref<9x256xf32, #tpu.memory_space<vmem>>, vector<1x256xf32>
    %50 = vector.broadcast %49 : vector<1x256xf32> to vector<2x256xf32>
    %51 = arith.mulf %48, %50 : vector<2x256xf32>
    %52 = arith.addf %47, %51 : vector<2x256xf32>
    %cst_11 = arith.constant 0.000000e+00 : f32
    %53 = vector.broadcast %cst_11 : f32 to vector<2x256xf32>
    %54 = arith.maximumf %52, %53 : vector<2x256xf32>
    %c0_12 = arith.constant 0 : index
    %55 = memref.load %arg1[%c0_12] : memref<1xf32, #tpu.memory_space<smem>>
    %56 = vector.broadcast %55 : f32 to vector<2x256xf32>
    %57 = arith.mulf %54, %56 : vector<2x256xf32>
    %58 = arith.negf %57 : vector<2x256xf32>
    %59 = math.exp %58 : vector<2x256xf32>
    %cst_13 = arith.constant 1.000000e+00 : f32
    %60 = vector.broadcast %cst_13 : f32 to vector<2x256xf32>
    %61 = arith.addf %60, %59 : vector<2x256xf32>
    %62 = arith.divf %60, %61 : vector<2x256xf32>
    %c0_14 = arith.constant 0 : index
    %63 = memref.load %arg3[%c0_14] : memref<8xf32, #tpu.memory_space<smem>>
    %64 = vector.broadcast %63 : f32 to vector<2x256xf32>
    %65 = arith.mulf %62, %64 : vector<2x256xf32>
    %c0_15 = arith.constant 0 : index
    %66 = memref.load %arg2[%c0_15] : memref<32xf32, #tpu.memory_space<smem>>
    %67 = vector.broadcast %66 : f32 to vector<2x256xf32>
    %68 = arith.mulf %1, %67 : vector<2x256xf32>
    %69 = arith.addf %65, %68 : vector<2x256xf32>
    %c8_16 = arith.constant 8 : index
    %70 = memref.load %arg2[%c8_16] : memref<32xf32, #tpu.memory_space<smem>>
    %71 = vector.broadcast %70 : f32 to vector<2x256xf32>
    %72 = arith.mulf %2, %71 : vector<2x256xf32>
    %73 = arith.addf %69, %72 : vector<2x256xf32>
    %c16 = arith.constant 16 : index
    %74 = memref.load %arg2[%c16] : memref<32xf32, #tpu.memory_space<smem>>
    %75 = vector.broadcast %74 : f32 to vector<2x256xf32>
    %76 = arith.mulf %3, %75 : vector<2x256xf32>
    %77 = arith.addf %73, %76 : vector<2x256xf32>
    %c24 = arith.constant 24 : index
    %78 = memref.load %arg2[%c24] : memref<32xf32, #tpu.memory_space<smem>>
    %79 = vector.broadcast %78 : f32 to vector<2x256xf32>
    %80 = arith.mulf %4, %79 : vector<2x256xf32>
    %81 = arith.addf %77, %80 : vector<2x256xf32>
    %82 = arith.negf %81 : vector<2x256xf32>
    %83 = math.exp %82 : vector<2x256xf32>
    %cst_17 = arith.constant 1.000000e+00 : f32
    %84 = vector.broadcast %cst_17 : f32 to vector<2x256xf32>
    %85 = arith.addf %84, %83 : vector<2x256xf32>
    %86 = arith.divf %84, %85 : vector<2x256xf32>
    %c0_18 = arith.constant 0 : index
    %c0_19 = arith.constant 0 : index
    %87 = vector.load %arg6[%c0_18, %c0_19] : memref<2x2048xf32, #tpu.memory_space<vmem>>, vector<2x256xf32>
    tpu.vector_store %arg6[%c0_18, %c0_19], %86 {strides = array<i32>} : memref<2x2048xf32, #tpu.memory_space<vmem>>, vector<2x256xf32>,
    %c1_20 = arith.constant 1 : index
    %88 = memref.load %arg3[%c1_20] : memref<8xf32, #tpu.memory_space<smem>>
    %89 = vector.broadcast %88 : f32 to vector<2x256xf32>
    %90 = arith.mulf %62, %89 : vector<2x256xf32>
    %c1_21 = arith.constant 1 : index
    %91 = memref.load %arg2[%c1_21] : memref<32xf32, #tpu.memory_space<smem>>
    %92 = vector.broadcast %91 : f32 to vector<2x256xf32>
    %93 = arith.mulf %1, %92 : vector<2x256xf32>
    %94 = arith.addf %90, %93 : vector<2x256xf32>
    %c9 = arith.constant 9 : index
    %95 = memref.load %arg2[%c9] : memref<32xf32, #tpu.memory_space<smem>>
    %96 = vector.broadcast %95 : f32 to vector<2x256xf32>
    %97 = arith.mulf %2, %96 : vector<2x256xf32>
    %98 = arith.addf %94, %97 : vector<2x256xf32>
    %c17 = arith.constant 17 : index
    %99 = memref.load %arg2[%c17] : memref<32xf32, #tpu.memory_space<smem>>
    %100 = vector.broadcast %99 : f32 to vector<2x256xf32>
    %101 = arith.mulf %3, %100 : vector<2x256xf32>
    %102 = arith.addf %98, %101 : vector<2x256xf32>
    %c25 = arith.constant 25 : index
    %103 = memref.load %arg2[%c25] : memref<32xf32, #tpu.memory_space<smem>>
    %104 = vector.broadcast %103 : f32 to vector<2x256xf32>
    %105 = arith.mulf %4, %104 : vector<2x256xf32>
    %106 = arith.addf %102, %105 : vector<2x256xf32>
    %107 = arith.negf %106 : vector<2x256xf32>
    %108 = math.exp %107 : vector<2x256xf32>
    %cst_22 = arith.constant 1.000000e+00 : f32
    %109 = vector.broadcast %cst_22 : f32 to vector<2x256xf32>
    %110 = arith.addf %109, %108 : vector<2x256xf32>
    %111 = arith.divf %109, %110 : vector<2x256xf32>
    %c0_23 = arith.constant 0 : index
    %c256 = arith.constant 256 : index
    %112 = vector.load %arg6[%c0_23, %c256] : memref<2x2048xf32, #tpu.memory_space<vmem>>, vector<2x256xf32>
    tpu.vector_store %arg6[%c0_23, %c256], %111 {strides = array<i32>} : memref<2x2048xf32, #tpu.memory_space<vmem>>, vector<2x256xf32>,
    %c2_24 = arith.constant 2 : index
    %113 = memref.load %arg3[%c2_24] : memref<8xf32, #tpu.memory_space<smem>>
    %114 = vector.broadcast %113 : f32 to vector<2x256xf32>
    %115 = arith.mulf %62, %114 : vector<2x256xf32>
    %c2_25 = arith.constant 2 : index
    %116 = memref.load %arg2[%c2_25] : memref<32xf32, #tpu.memory_space<smem>>
    %117 = vector.broadcast %116 : f32 to vector<2x256xf32>
    %118 = arith.mulf %1, %117 : vector<2x256xf32>
    %119 = arith.addf %115, %118 : vector<2x256xf32>
    %c10 = arith.constant 10 : index
    %120 = memref.load %arg2[%c10] : memref<32xf32, #tpu.memory_space<smem>>
    %121 = vector.broadcast %120 : f32 to vector<2x256xf32>
    %122 = arith.mulf %2, %121 : vector<2x256xf32>
    %123 = arith.addf %119, %122 : vector<2x256xf32>
    %c18 = arith.constant 18 : index
    %124 = memref.load %arg2[%c18] : memref<32xf32, #tpu.memory_space<smem>>
    %125 = vector.broadcast %124 : f32 to vector<2x256xf32>
    %126 = arith.mulf %3, %125 : vector<2x256xf32>
    %127 = arith.addf %123, %126 : vector<2x256xf32>
    %c26 = arith.constant 26 : index
    %128 = memref.load %arg2[%c26] : memref<32xf32, #tpu.memory_space<smem>>
    %129 = vector.broadcast %128 : f32 to vector<2x256xf32>
    %130 = arith.mulf %4, %129 : vector<2x256xf32>
    %131 = arith.addf %127, %130 : vector<2x256xf32>
    %132 = arith.negf %131 : vector<2x256xf32>
    %133 = math.exp %132 : vector<2x256xf32>
    %cst_26 = arith.constant 1.000000e+00 : f32
    %134 = vector.broadcast %cst_26 : f32 to vector<2x256xf32>
    %135 = arith.addf %134, %133 : vector<2x256xf32>
    %136 = arith.divf %134, %135 : vector<2x256xf32>
    %c0_27 = arith.constant 0 : index
    %c512 = arith.constant 512 : index
    %137 = vector.load %arg6[%c0_27, %c512] : memref<2x2048xf32, #tpu.memory_space<vmem>>, vector<2x256xf32>
    tpu.vector_store %arg6[%c0_27, %c512], %136 {strides = array<i32>} : memref<2x2048xf32, #tpu.memory_space<vmem>>, vector<2x256xf32>,
    %c3_28 = arith.constant 3 : index
    %138 = memref.load %arg3[%c3_28] : memref<8xf32, #tpu.memory_space<smem>>
    %139 = vector.broadcast %138 : f32 to vector<2x256xf32>
    %140 = arith.mulf %62, %139 : vector<2x256xf32>
    %c3_29 = arith.constant 3 : index
    %141 = memref.load %arg2[%c3_29] : memref<32xf32, #tpu.memory_space<smem>>
    %142 = vector.broadcast %141 : f32 to vector<2x256xf32>
    %143 = arith.mulf %1, %142 : vector<2x256xf32>
    %144 = arith.addf %140, %143 : vector<2x256xf32>
    %c11 = arith.constant 11 : index
    %145 = memref.load %arg2[%c11] : memref<32xf32, #tpu.memory_space<smem>>
    %146 = vector.broadcast %145 : f32 to vector<2x256xf32>
    %147 = arith.mulf %2, %146 : vector<2x256xf32>
    %148 = arith.addf %144, %147 : vector<2x256xf32>
    %c19 = arith.constant 19 : index
    %149 = memref.load %arg2[%c19] : memref<32xf32, #tpu.memory_space<smem>>
    %150 = vector.broadcast %149 : f32 to vector<2x256xf32>
    %151 = arith.mulf %3, %150 : vector<2x256xf32>
    %152 = arith.addf %148, %151 : vector<2x256xf32>
    %c27 = arith.constant 27 : index
    %153 = memref.load %arg2[%c27] : memref<32xf32, #tpu.memory_space<smem>>
    %154 = vector.broadcast %153 : f32 to vector<2x256xf32>
    %155 = arith.mulf %4, %154 : vector<2x256xf32>
    %156 = arith.addf %152, %155 : vector<2x256xf32>
    %157 = arith.negf %156 : vector<2x256xf32>
    %158 = math.exp %157 : vector<2x256xf32>
    %cst_30 = arith.constant 1.000000e+00 : f32
    %159 = vector.broadcast %cst_30 : f32 to vector<2x256xf32>
    %160 = arith.addf %159, %158 : vector<2x256xf32>
    %161 = arith.divf %159, %160 : vector<2x256xf32>
    %c0_31 = arith.constant 0 : index
    %c768 = arith.constant 768 : index
    %162 = vector.load %arg6[%c0_31, %c768] : memref<2x2048xf32, #tpu.memory_space<vmem>>, vector<2x256xf32>
    tpu.vector_store %arg6[%c0_31, %c768], %161 {strides = array<i32>} : memref<2x2048xf32, #tpu.memory_space<vmem>>, vector<2x256xf32>,
    %c4_32 = arith.constant 4 : index
    %163 = memref.load %arg3[%c4_32] : memref<8xf32, #tpu.memory_space<smem>>
    %164 = vector.broadcast %163 : f32 to vector<2x256xf32>
    %165 = arith.mulf %62, %164 : vector<2x256xf32>
    %c4_33 = arith.constant 4 : index
    %166 = memref.load %arg2[%c4_33] : memref<32xf32, #tpu.memory_space<smem>>
    %167 = vector.broadcast %166 : f32 to vector<2x256xf32>
    %168 = arith.mulf %1, %167 : vector<2x256xf32>
    %169 = arith.addf %165, %168 : vector<2x256xf32>
    %c12 = arith.constant 12 : index
    %170 = memref.load %arg2[%c12] : memref<32xf32, #tpu.memory_space<smem>>
    %171 = vector.broadcast %170 : f32 to vector<2x256xf32>
    %172 = arith.mulf %2, %171 : vector<2x256xf32>
    %173 = arith.addf %169, %172 : vector<2x256xf32>
    %c20 = arith.constant 20 : index
    %174 = memref.load %arg2[%c20] : memref<32xf32, #tpu.memory_space<smem>>
    %175 = vector.broadcast %174 : f32 to vector<2x256xf32>
    %176 = arith.mulf %3, %175 : vector<2x256xf32>
    %177 = arith.addf %173, %176 : vector<2x256xf32>
    %c28 = arith.constant 28 : index
    %178 = memref.load %arg2[%c28] : memref<32xf32, #tpu.memory_space<smem>>
    %179 = vector.broadcast %178 : f32 to vector<2x256xf32>
    %180 = arith.mulf %4, %179 : vector<2x256xf32>
    %181 = arith.addf %177, %180 : vector<2x256xf32>
    %182 = arith.negf %181 : vector<2x256xf32>
    %183 = math.exp %182 : vector<2x256xf32>
    %cst_34 = arith.constant 1.000000e+00 : f32
    %184 = vector.broadcast %cst_34 : f32 to vector<2x256xf32>
    %185 = arith.addf %184, %183 : vector<2x256xf32>
    %186 = arith.divf %184, %185 : vector<2x256xf32>
    %c0_35 = arith.constant 0 : index
    %c1024 = arith.constant 1024 : index
    %187 = vector.load %arg6[%c0_35, %c1024] : memref<2x2048xf32, #tpu.memory_space<vmem>>, vector<2x256xf32>
    tpu.vector_store %arg6[%c0_35, %c1024], %186 {strides = array<i32>} : memref<2x2048xf32, #tpu.memory_space<vmem>>, vector<2x256xf32>,
    %c5_36 = arith.constant 5 : index
    %188 = memref.load %arg3[%c5_36] : memref<8xf32, #tpu.memory_space<smem>>
    %189 = vector.broadcast %188 : f32 to vector<2x256xf32>
    %190 = arith.mulf %62, %189 : vector<2x256xf32>
    %c5_37 = arith.constant 5 : index
    %191 = memref.load %arg2[%c5_37] : memref<32xf32, #tpu.memory_space<smem>>
    %192 = vector.broadcast %191 : f32 to vector<2x256xf32>
    %193 = arith.mulf %1, %192 : vector<2x256xf32>
    %194 = arith.addf %190, %193 : vector<2x256xf32>
    %c13 = arith.constant 13 : index
    %195 = memref.load %arg2[%c13] : memref<32xf32, #tpu.memory_space<smem>>
    %196 = vector.broadcast %195 : f32 to vector<2x256xf32>
    %197 = arith.mulf %2, %196 : vector<2x256xf32>
    %198 = arith.addf %194, %197 : vector<2x256xf32>
    %c21 = arith.constant 21 : index
    %199 = memref.load %arg2[%c21] : memref<32xf32, #tpu.memory_space<smem>>
    %200 = vector.broadcast %199 : f32 to vector<2x256xf32>
    %201 = arith.mulf %3, %200 : vector<2x256xf32>
    %202 = arith.addf %198, %201 : vector<2x256xf32>
    %c29 = arith.constant 29 : index
    %203 = memref.load %arg2[%c29] : memref<32xf32, #tpu.memory_space<smem>>
    %204 = vector.broadcast %203 : f32 to vector<2x256xf32>
    %205 = arith.mulf %4, %204 : vector<2x256xf32>
    %206 = arith.addf %202, %205 : vector<2x256xf32>
    %207 = arith.negf %206 : vector<2x256xf32>
    %208 = math.exp %207 : vector<2x256xf32>
    %cst_38 = arith.constant 1.000000e+00 : f32
    %209 = vector.broadcast %cst_38 : f32 to vector<2x256xf32>
    %210 = arith.addf %209, %208 : vector<2x256xf32>
    %211 = arith.divf %209, %210 : vector<2x256xf32>
    %c0_39 = arith.constant 0 : index
    %c1280 = arith.constant 1280 : index
    %212 = vector.load %arg6[%c0_39, %c1280] : memref<2x2048xf32, #tpu.memory_space<vmem>>, vector<2x256xf32>
    tpu.vector_store %arg6[%c0_39, %c1280], %211 {strides = array<i32>} : memref<2x2048xf32, #tpu.memory_space<vmem>>, vector<2x256xf32>,
    %c6_40 = arith.constant 6 : index
    %213 = memref.load %arg3[%c6_40] : memref<8xf32, #tpu.memory_space<smem>>
    %214 = vector.broadcast %213 : f32 to vector<2x256xf32>
    %215 = arith.mulf %62, %214 : vector<2x256xf32>
    %c6_41 = arith.constant 6 : index
    %216 = memref.load %arg2[%c6_41] : memref<32xf32, #tpu.memory_space<smem>>
    %217 = vector.broadcast %216 : f32 to vector<2x256xf32>
    %218 = arith.mulf %1, %217 : vector<2x256xf32>
    %219 = arith.addf %215, %218 : vector<2x256xf32>
    %c14 = arith.constant 14 : index
    %220 = memref.load %arg2[%c14] : memref<32xf32, #tpu.memory_space<smem>>
    %221 = vector.broadcast %220 : f32 to vector<2x256xf32>
    %222 = arith.mulf %2, %221 : vector<2x256xf32>
    %223 = arith.addf %219, %222 : vector<2x256xf32>
    %c22 = arith.constant 22 : index
    %224 = memref.load %arg2[%c22] : memref<32xf32, #tpu.memory_space<smem>>
    %225 = vector.broadcast %224 : f32 to vector<2x256xf32>
    %226 = arith.mulf %3, %225 : vector<2x256xf32>
    %227 = arith.addf %223, %226 : vector<2x256xf32>
    %c30 = arith.constant 30 : index
    %228 = memref.load %arg2[%c30] : memref<32xf32, #tpu.memory_space<smem>>
    %229 = vector.broadcast %228 : f32 to vector<2x256xf32>
    %230 = arith.mulf %4, %229 : vector<2x256xf32>
    %231 = arith.addf %227, %230 : vector<2x256xf32>
    %232 = arith.negf %231 : vector<2x256xf32>
    %233 = math.exp %232 : vector<2x256xf32>
    %cst_42 = arith.constant 1.000000e+00 : f32
    %234 = vector.broadcast %cst_42 : f32 to vector<2x256xf32>
    %235 = arith.addf %234, %233 : vector<2x256xf32>
    %236 = arith.divf %234, %235 : vector<2x256xf32>
    %c0_43 = arith.constant 0 : index
    %c1536 = arith.constant 1536 : index
    %237 = vector.load %arg6[%c0_43, %c1536] : memref<2x2048xf32, #tpu.memory_space<vmem>>, vector<2x256xf32>
    tpu.vector_store %arg6[%c0_43, %c1536], %236 {strides = array<i32>} : memref<2x2048xf32, #tpu.memory_space<vmem>>, vector<2x256xf32>,
    %c7_44 = arith.constant 7 : index
    %238 = memref.load %arg3[%c7_44] : memref<8xf32, #tpu.memory_space<smem>>
    %239 = vector.broadcast %238 : f32 to vector<2x256xf32>
    %240 = arith.mulf %62, %239 : vector<2x256xf32>
    %c7_45 = arith.constant 7 : index
    %241 = memref.load %arg2[%c7_45] : memref<32xf32, #tpu.memory_space<smem>>
    %242 = vector.broadcast %241 : f32 to vector<2x256xf32>
    %243 = arith.mulf %1, %242 : vector<2x256xf32>
    %244 = arith.addf %240, %243 : vector<2x256xf32>
    %c15 = arith.constant 15 : index
    %245 = memref.load %arg2[%c15] : memref<32xf32, #tpu.memory_space<smem>>
    %246 = vector.broadcast %245 : f32 to vector<2x256xf32>
    %247 = arith.mulf %2, %246 : vector<2x256xf32>
    %248 = arith.addf %244, %247 : vector<2x256xf32>
    %c23 = arith.constant 23 : index
    %249 = memref.load %arg2[%c23] : memref<32xf32, #tpu.memory_space<smem>>
    %250 = vector.broadcast %249 : f32 to vector<2x256xf32>
    %251 = arith.mulf %3, %250 : vector<2x256xf32>
    %252 = arith.addf %248, %251 : vector<2x256xf32>
    %c31 = arith.constant 31 : index
    %253 = memref.load %arg2[%c31] : memref<32xf32, #tpu.memory_space<smem>>
    %254 = vector.broadcast %253 : f32 to vector<2x256xf32>
    %255 = arith.mulf %4, %254 : vector<2x256xf32>
    %256 = arith.addf %252, %255 : vector<2x256xf32>
    %257 = arith.negf %256 : vector<2x256xf32>
    %258 = math.exp %257 : vector<2x256xf32>
    %cst_46 = arith.constant 1.000000e+00 : f32
    %259 = vector.broadcast %cst_46 : f32 to vector<2x256xf32>
    %260 = arith.addf %259, %258 : vector<2x256xf32>
    %261 = arith.divf %259, %260 : vector<2x256xf32>
    %c0_47 = arith.constant 0 : index
    %c1792 = arith.constant 1792 : index
    %262 = vector.load %arg6[%c0_47, %c1792] : memref<2x2048xf32, #tpu.memory_space<vmem>>, vector<2x256xf32>
    tpu.vector_store %arg6[%c0_47, %c1792], %261 {strides = array<i32>} : memref<2x2048xf32, #tpu.memory_space<vmem>>, vector<2x256xf32>,
    return
  }
  func.func @transform_0(%arg0: i32, %arg1: memref<1xf32, #tpu.memory_space<smem>>, %arg2: memref<32xf32, #tpu.memory_space<smem>>, %arg3: memref<8xf32, #tpu.memory_space<smem>>) -> (i32, i32) {
    %c0_i32 = arith.constant 0 : i32
    %c0_i32_0 = arith.constant 0 : i32
    %c0_i32_1 = arith.constant 0 : i32
    return %c0_i32, %c0_i32_0 : i32, i32
  }
  func.func @transform_1(%arg0: i32, %arg1: memref<1xf32, #tpu.memory_space<smem>>, %arg2: memref<32xf32, #tpu.memory_space<smem>>, %arg3: memref<8xf32, #tpu.memory_space<smem>>) -> (i32, i32) {
    %c0_i32 = arith.constant 0 : i32
    %c0_i32_0 = arith.constant 0 : i32
    return %arg0, %c0_i32 : i32, i32
  }
  func.func @transform_2(%arg0: i32, %arg1: memref<1xf32, #tpu.memory_space<smem>>, %arg2: memref<32xf32, #tpu.memory_space<smem>>, %arg3: memref<8xf32, #tpu.memory_space<smem>>) -> (i32, i32) {
    %c0_i32 = arith.constant 0 : i32
    %c0_i32_0 = arith.constant 0 : i32
    return %arg0, %c0_i32 : i32, i32
  }
}

</mosaic_0001>

<bundles_post_ra>
// kernel: tpu_custom_call.1
= control target key start
LH: loop header
LB: loop body
LE: loop exit
PB: predicated region body
PF: predicated region fallthrough
CT: control target
= control target key end

     0   :  { %s1169_s0 = inlined_call_operand.<no memory space> [shape: f32[1], index: 0, kind: input, shape index: {}]   ;;  %s1170_s1 = inlined_call_operand.vmem [shape: f32[32], index: 1, kind: input, shape index: {}]   ;;  %s1171_s3 = inlined_call_operand.hbm [shape: f32[9,256], index: 3, kind: input, shape index: {}]   ;;  %s1172_s4 = inlined_call_operand.hbm [shape: f32[2,1024], index: 4, kind: input, shape index: {}]   ;;  %s1173_s5 = inlined_call_operand.hbm [shape: f32[2,2048], index: 5, kind: output, shape index: {}]   ;;  %s1174_s2 = inlined_call_operand.vmem [shape: f32[8], index: 2, kind: input, shape index: {}]  }
   0x1   :  { %s11_s20 = sshll.u32 %s1170_s1, 4  ;;  %s15_s23 = sshll.u32 %s1174_s2, 4  ;;  %s12_s20 = int_to_ptr.vmem [resolvable:$true] %s11_s20  ;;  %s16_s23 = int_to_ptr.vmem [resolvable:$true] %s15_s23 }
   0x2   :  { %s701_s24 = scalar_lea.vmem %s12_s20, 16  ;;  %p706_p1 = scmp.lt.s32.totalorder %s12_s20, %s12_s20 }
   0x3   :  { %p702_p0 = scmp.ne.s32.totalorder %s12_s20, %s701_s24  ;;  %p707_p2 = scmp.lt.s32.totalorder %s701_s24, %s701_s24 }
   0x5   :  { %p708_p3 = por %p707_p2, %p706_p1 }
   0x7   :  { %p709_p4 = pnand %p708_p3, %p702_p0 }
   0x9   :  { %712 = shalt.err (!%p709_p4)  }
   0xa   :  { %s799_s25 = smov [#allocation4]   ;;  %s713_s26 = scalar_lea.vmem %s16_s23, 16 }
   0xb   :  { %14 = dma.vmem_to_smem %s12_s20, 16, %s799_s25, [#allocation2] }
   0xc   :  { %p714_p5 = scmp.ne.s32.totalorder %s16_s23, %s713_s26  ;;  %p718_p6 = scmp.lt.s32.totalorder %s16_s23, %s16_s23 }
   0xd   :  { %p719_p7 = scmp.lt.s32.totalorder %s713_s26, %s713_s26 }
   0xf   :  { %p720_p8 = por %p719_p7, %p718_p6 }
  0x11   :  { %p721_p9 = pnand %p720_p8, %p714_p5 }
  0x13   :  { %724 = shalt.err (!%p721_p9)  }
  0x14   :  { %s800_s1 = smov [#allocation5]  }
  0x15   :  { %18 = dma.vmem_to_smem %s16_s23, 16, %s800_s1, [#allocation2] }
  0x16   :  { %791 = dma.done.wait [#allocation2], 32 }
  0x17   :  { %792 = vsyncadd [#allocation2], 4294967264 }
  0x18   :  { %20 = sfence }
  0x19   :  { %21 = vsyncpa [#allocation7], 0 }
  0x1a   :  { %22 = vsyncpa [#allocation10], 0 }
  0x1b   :  { %23 = vsyncpa [#allocation8], 0  ;;  %s801_s2 = smov [#allocation6]   ;;  %s725_s30 = scalar_lea.hbm %s1171_s3, 512 }
  0x1c   :  { %s29_s27 = sshll.u32 %s801_s2, 4  ;;  %p726_p10 = scmp.ne.s32.totalorder %s1171_s3, %s725_s30  ;;  %s30_s27 = int_to_ptr.vmem [resolvable:$true] %s29_s27 }
  0x1d   :  { %p729_p11 = scmp.lt.u32.totalorder %s725_s30, %s1171_s3 }
  0x1f   :  { %p731_p12 = pnand %p729_p11, %p726_p10 }
  0x21   :  { %734 = shalt.err (!%p731_p12)
}
  0x22   :  { %s735_s10 = scalar_lea.vmem %s30_s27, 512  ;;  %p740_p0 = scmp.lt.s32.totalorder %s30_s27, %s30_s27 }
  0x23   :  { %p736_p13 = scmp.ne.s32.totalorder %s30_s27, %s735_s10  ;;  %p741_p1 = scmp.lt.s32.totalorder %s735_s10, %s735_s10 }
  0x25   :  { %p742_p2 = por %p741_p1, %p740_p0 }
  0x27   :  { %p743_p3 = pnand %p742_p2, %p736_p13 }
  0x29   :  { %746 = shalt.err (!%p743_p3)
}
  0x2a   :  { %s802_s11 = smov 256   ;;  %s803_s12 = smov 16  }
  0x2b   :  { %35 = dma.hbm_to_vmem [thread:$0]  %s1171_s3, 512, %s30_s27, [#allocation7], %s802_s11, %s802_s11, %s803_s12  }
  0x2c   :  { %s804_s15 = smov [#allocation9]   ;;  %s747_s19 = scalar_lea.hbm %s1172_s4, 256 }
  0x2d   :  { %s42_s16 = sshll.u32 %s804_s15, 4  ;;  %p748_p4 = scmp.ne.s32.totalorder %s1172_s4, %s747_s19  ;;  %s43_s16 = int_to_ptr.vmem [resolvable:$true] %s42_s16 }
  0x2e   :  { %p751_p5 = scmp.lt.u32.totalorder %s747_s19, %s1172_s4 }
  0x30   :  { %p753_p6 = pnand %p751_p5, %p748_p4 }
  0x32   :  { %756 = shalt.err (!%p753_p6)
}
  0x33   :  { %s757_s24 = scalar_lea.vmem %s43_s16, 256  ;;  %p762_p8 = scmp.lt.s32.totalorder %s43_s16, %s43_s16 }
  0x34   :  { %p758_p7 = scmp.ne.s32.totalorder %s43_s16, %s757_s24  ;;  %p763_p9 = scmp.lt.s32.totalorder %s757_s24, %s757_s24 }
  0x36   :  { %p764_p10 = por %p763_p9, %p762_p8 }
  0x38   :  { %p765_p11 = pnand %p764_p10, %p758_p7 }
  0x3a   :  { %768 = shalt.err (!%p765_p11)
}
  0x3b   :  { %45 = dma.hbm_to_vmem [thread:$0]  %s1172_s4, 256, %s43_s16, [#allocation10]  }
  0x3c   :  { %793 = dma.done.wait [#allocation7], 512  }
  0x3d   :  { %794 = vsyncadd [#allocation7], 4294966784 }
  0x3e   :  { %795 = dma.done.wait [#allocation10], 256  }
  0x3f   :  { %796 = vsyncadd [#allocation10], 4294967040  ;;  %v67_v0 = vlaneseq  ;;  %v805_v1 = vmov 1983009808   ;;  %v875_v3 = vld [vmem:[#allocation9] sm:$0xff]  ;;  %v877_v4 = vld [vmem:[#allocation9 + $0x8] sm:$0xff] }
  0x40   :  { %v77_v2 = vunpack.c.l.s4 %v805_v1  ;;  %v880_v5 = vrot.slane %v875_v3, 4  ;;  %v885_v7 = vrot.slane %v877_v4, 4  ;;  %v65_v16 = vld [vmem:[#allocation6 + $0x4] ss:$8 sm:$0x3]  ;;  %s806_s4 = smov 17  }
  0x41   :  { %v68_v8 = vshrl.u32 %v67_v0, 7  ;;  %s807_s26 = smov 15   ;;  %s808_s1 = smov 1   ;;  %v903_v24 = vand.u32 127, %v67_v0 }
  0x42   :  { %v57_v6 = vadd.f32 %v880_v5, %v875_v3  ;;  %v78_v9 = vunpack.c.0.s8 %v77_v2  ;;  %s809_s2 = smov 127   ;;  %s810_s27 = smov 113   ;;  %v139_v25 = vld [vmem:[#allocation6 + $0x1] ss:$8 sm:$0x3] }
  0x43   :  { %v891_v14 = vsub.s32 0, %v68_v8  ;;  %v893_v15 = vsub.s32 1, %v68_v8  ;;  %s811_s28 = smov 112   ;;  %s812_s29 = smov 111   ;;  %vm135_vm0 = vcmp.lt.s32.totalorder %v903_v24, 16  ;;  %vm169_vm1 = vcmp.lt.s32.totalorder %v903_v24, 15 }
  0x44   :  { %v58_v10 = vadd.f32 %v57_v6, %v877_v4  ;;  %v889_v12 = vsub.s32 %v78_v9, %v68_v8  ;;  %v173_v30 = vld [vmem:[#allocation6 + $0x2] ss:$8 sm:$0x3]  ;;  %v207_v39 = vld [vmem:[#allocation6 + $0x3] ss:$8 sm:$0x3] }
  0x45   :  { %v70_v18 = vrot.slane %v65_v16, %v891_v14  ;;  %v74_v19 = vrot.slane %v65_v16, %v893_v15  ;;  %v144_v28 = vrot.slane %v139_v25, %v891_v14  ;;  %v148_v29 = vrot.slane %v139_v25, %v893_v15  ;;  %v105_v40 = vld [vmem:[#allocation6] ss:$8 sm:$0x3]  ;;  %v241_v48 = vld [vmem:[#allocation6 + $0x5] ss:$8 sm:$0x3] }
  0x46   :  { %v62_v11 = vadd.f32 %v885_v7, %v58_v10  ;;  %v178_v37 = vrot.slane %v173_v30, %v891_v14  ;;  %v182_v38 = vrot.slane %v173_v30, %v893_v15  ;;  %vm203_vm2 = vcmp.lt.s32.totalorder %v903_v24, 1  ;;  %v275_v2 = vld [vmem:[#allocation6 + $0x6] ss:$8 sm:$0x3]  ;;  %s957_s7 = sld [smem:[#allocation5]]  ;;  %s961_s9 = sld [smem:[#allocation5 + $0x1]] }
  0x47   :  { %v75_v21 = vcombine.low %v70_v18, %v74_v19  ;;  %v212_v46 = vrot.slane %v207_v39, %v891_v14  ;;  %v216_v47 = vrot.slane %v207_v39, %v893_v15  ;;  %vm102_vm3 = vcmp.lt.s32.totalorder %v903_v24, 17  ;;  %s959_s8 = sld [smem:[#allocation4]]  ;;  %s963_s10 = sld [smem:[#allocation4 + $0x1]] }
  0x48   :  { %v63_v13 = vmul.f32 0.25, %v62_v11  ;;  %v110_v51 = vrot.slane %v105_v40, %v891_v14  ;;  %v114_v52 = vrot.slane %v105_v40, %v893_v15  ;;  %vm237_vm4 = vcmp.lt.s32.totalorder %v903_v24, 127  ;;  %s965_s11 = sld [smem:[#allocation4 + $0x8]]  ;;  %s969_s13 = sld [smem:[#allocation4 + $0x9]] }
  0x49   :  { %v82_v22 = vrot.slane %v75_v21, %v889_v12  ;;  %v246_v56 = vrot.slane %v241_v48, %v891_v14  ;;  %v250_v0 = vrot.slane %v241_v48, %v893_v15  ;;  %vm271_vm5 = vcmp.lt.s32.totalorder %v903_v24, 113  ;;  %v309_v21 = vld [vmem:[#allocation6 + $0x7] ss:$8 sm:$0x3]  ;;  %s971_s14 = sld [smem:[#allocation4 + $0x2]]  ;;  %s977_s16 = sld [smem:[#allocation4 + $0x11]] }
  0x4a   :  { %v92_v17 = vrot.slane %v63_v13, %v889_v12  ;;  %v280_v18 = vrot.slane %v275_v2, %v891_v14  ;;  %v284_v19 = vrot.slane %v275_v2, %v893_v15  ;;  %vm305_vm6 = vcmp.lt.s32.totalorder %v903_v24, 112  ;;  %s975_s15 = sld [smem:[#allocation4 + $0xa]]  ;;  %s981_s18 = sld [smem:[#allocation4 + $0x18]] }
  0x4b   :  { %v901_v23 = vmul.f32 %v82_v22, %v63_v13  ;;  %vm339_vm7 = vcmp.lt.s32.totalorder %v903_v24, 111  ;;  %s979_s17 = sld [smem:[#allocation4 + $0x12]]  ;;  %s983_s19 = sld [smem:[#allocation5 + $0x3]] }
  0x4c   :  { %131 = vrot.lane.b32.xlu1 %v92_v17, %s803_s12  ;;  %96 = vrot.lane.b32.xlu0 %v92_v17, %s806_s4  ;;  %v93_v20 = vcombine.high %v92_v17, %v92_v17  ;;  %s985_s20 = sld [smem:[#allocation4 + $0x19]]  ;;  %s987_s21 = sld [smem:[#allocation4 + $0x1a]] }
  0x4d   :  { %s989_s22 = sld [smem:[#allocation4 + $0x3]]  ;;  %s997_s25 = sld [smem:[#allocation5 + $0x4]]  ;;  %v409_v2 = vstv %s963_s10 }
  0x4e   :  { %s991_s23 = sld [smem:[#allocation4 + $0xb]]  ;;  %s1031_s30 = sld [smem:[#allocation4 + $0x15]] }
  0x4f   :  { %s993_s24 = sld [smem:[#allocation4 + $0x13]]  ;;  %s1033_s6 = sld [smem:[#allocation4 + $0x1d]] }
  0x50   :  { %165 = vrot.lane.b32.xlu0 %v92_v17, %s807_s26  ;;  %133 = vrot.lane.b32.xlu1 %v93_v20, %s803_s12  ;;  %s967_s12 = sld [smem:[#allocation5 + $0x2]]  ;;  %s995_s3 = sld [smem:[#allocation4 + $0x1b]] }
  0x51   :  { %s1047_s10 = sld [smem:[#allocation4 + $0xe]] }
  0x54   :  { %199 = vrot.lane.b32.xlu0 %v92_v17, %s808_s1  ;;  %167 = vrot.lane.b32.xlu1 %v93_v20, %s807_s26  ;;  %s1003_s26 = sld [smem:[#allocation4 + $0xc]] }
  0x58   :  { %201 = vrot.lane.b32.xlu1 %v93_v20, %s808_s1  ;;  %98 = vrot.lane.b32.xlu0 %v93_v20, %s806_s4  ;;  %s999_s4 = sld [smem:[#allocation4 + $0x4]] }
  0x59   :  { %s1005_s1 = sld [smem:[#allocation4 + $0x14]] }
  0x5c   :  { %235 = vrot.lane.b32.xlu1 %v93_v20, %s809_s2  ;;  %233 = vrot.lane.b32.xlu0 %v92_v17, %s809_s2  ;;  %s1011_s2 = sld [smem:[#allocation4 + $0x1c]] }
  0x60   :  { %269 = vrot.lane.b32.xlu1 %v93_v20, %s810_s27  ;;  %267 = vrot.lane.b32.xlu0 %v92_v17, %s810_s27  ;;  %s1013_s27 = sld [smem:[#allocation5 + $0x5]] }
  0x64   :  { %303 = vrot.lane.b32.xlu1 %v93_v20, %s811_s28  ;;  %301 = vrot.lane.b32.xlu0 %v92_v17, %s811_s28  ;;  %s1019_s28 = sld [smem:[#allocation4 + $0x5]] }
  0x68   :  { %337 = vrot.lane.b32.xlu1 %v93_v20, %s812_s29  ;;  %335 = vrot.lane.b32.xlu0 %v92_v17, %s812_s29  ;;  %s1021_s29 = sld [smem:[#allocation4 + $0xd]] }
  0xbe   :  { %v132_v26 = vpop.permute.xlu1 %131  ;;  %v97_v27 = vpop.permute.xlu0 %96 }
  0xc2   :  { %v166_v31 = vpop.permute.xlu0 %165  ;;  %v134_v32 = vpop.permute.xlu1 %133 }
  0xc3   :  { %v136_v33 = vsel %vm135_vm0, %v132_v26, %v134_v32  ;;  %v137_v34 = vsel %vm135_vm0, %v134_v32, %v132_v26 }
  0xc4   :  { %v151_v35 = vmul.f32 %v144_v28, %v137_v34  ;;  %v152_v36 = vmul.f32 %v148_v29, %v136_v33  ;;  %v314_v33 = vrot.slane %v309_v21, %v891_v14  ;;  %v318_v34 = vrot.slane %v309_v21, %v893_v15 }
  0xc5   :  { %v443_v21 = vstv %s979_s17  ;;  %s1087_s17 = sld [smem:[#allocation5 + $0x6]] }
  0xc6   :  { %v155_v41 = vcombine.low %v151_v35, %v152_v36  ;;  %v200_v42 = vpop.permute.xlu0 %199  ;;  %v168_v43 = vpop.permute.xlu1 %167 }
  0xc7   :  { %v170_v44 = vsel %vm169_vm1, %v166_v31, %v168_v43  ;;  %v171_v45 = vsel %vm169_vm1, %v168_v43, %v166_v31 }
  0xc8   :  { %v185_v49 = vmul.f32 %v178_v37, %v171_v45  ;;  %v186_v50 = vmul.f32 %v182_v38, %v170_v44  ;;  %v343_v37 = vld [vmem:[#allocation6 + $0x10] ss:$8 sm:$0x3] }
  0xca   :  { %v189_v53 = vcombine.low %v185_v49, %v186_v50  ;;  %v202_v54 = vpop.permute.xlu1 %201  ;;  %v99_v55 = vpop.permute.xlu0 %98 }
  0xcb   :  { %v204_v57 = vsel %vm203_vm2, %v200_v42, %v202_v54  ;;  %v205_v58 = vsel %vm203_vm2, %v202_v54, %v200_v42  ;;  %v103_v59 = vsel %vm102_vm3, %v97_v27, %v99_v55  ;;  %v104_v60 = vsel %vm102_vm3, %v99_v55, %v97_v27 }
  0xcc   :  { %v219_v61 = vmul.f32 %v212_v46, %v205_v58  ;;  %v220_v62 = vmul.f32 %v216_v47, %v204_v57  ;;  %v117_v63 = vmul.f32 %v110_v51, %v104_v60  ;;  %v118_v1 = vmul.f32 %v114_v52, %v103_v59 }
  0xcd   :  { %v162_v27 = vrot.slane %v155_v41, %v889_v12  ;;  %v196_v35 = vrot.slane %v189_v53, %v889_v12  ;;  %v348_v46 = vrot.slane %v343_v37, %v891_v14  ;;  %v352_v47 = vrot.slane %v343_v37, %v893_v15 }
  0xce   :  { %v223_v6 = vcombine.low %v219_v61, %v220_v62  ;;  %v236_v8 = vpop.permute.xlu1 %235  ;;  %v234_v9 = vpop.permute.xlu0 %233  ;;  %v121_v10 = vcombine.low %v117_v63, %v118_v1  ;;  %v371_v63 = vstv %s1169_s0  ;;  %s973_s0 = sld [smem:[#allocation4 + $0x10]]  ;;  %v383_v1 = vstv %s959_s8  ;;  %s1045_s8 = sld [smem:[#allocation4 + $0x6]] }
  0xcf   :  { %v238_v11 = vsel %vm237_vm4, %v234_v9, %v236_v8  ;;  %v239_v13 = vsel %vm237_vm4, %v236_v8, %v234_v9  ;;  %v387_v8 = vstv %s965_s11  ;;  %v413_v9 = vstv %s969_s13  ;;  %s1059_s11 = sld [smem:[#allocation4 + $0x16]] }
  0xd0   :  { %v253_v16 = vmul.f32 %v246_v56, %v238_v11  ;;  %v254_v17 = vmul.f32 %v250_v0, %v239_v13  ;;  %v128_v20 = vrot.slane %v121_v10, %v889_v12  ;;  %v230_v41 = vrot.slane %v223_v6, %v889_v12  ;;  %s1061_s13 = sld [smem:[#allocation4 + $0x1e]] }
  0xd1   :  { %v380_v6 = vstv %s957_s7  ;;  %v435_v10 = vstv %s971_s14  ;;  %v406_v13 = vstv %s961_s9  ;;  %s1068_s14 = sld [smem:[#allocation4 + $0x7]]  ;;  %s813_s7 = smov [#allocation11]  }
  0xd2   :  { %v257_v22 = vcombine.low %v253_v16, %v254_v17  ;;  %v270_v25 = vpop.permute.xlu1 %269  ;;  %v268_v26 = vpop.permute.xlu0 %267  ;;  %v130_v28 = vadd.f32 %v128_v20, %v901_v23  ;;  %v417_v16 = vstv %s977_s16  ;;  %v439_v17 = vstv %s975_s15  ;;  %s1078_s15 = sld [smem:[#allocation4 + $0x17]]  ;;  %s593_s9 = sshll.u32 %s813_s7, 4  ;;  %s594_s9 = int_to_ptr.vmem [resolvable:$true] %s593_s9 }
  0xd3   :  { %v272_v29 = vsel %vm271_vm5, %v268_v26, %v270_v25  ;;  %v273_v30 = vsel %vm271_vm5, %v270_v25, %v268_v26  ;;  %v432_v20 = vstv %s967_s12  ;;  %v395_v25 = vstv %s981_s18  ;;  %s1080_s16 = sld [smem:[#allocation4 + $0x1f]]  ;;  %s769_s12 = scalar_lea.vmem %s594_s9, 512 }
  0xd4   :  { %v287_v31 = vmul.f32 %v280_v18, %v272_v29  ;;  %v288_v32 = vmul.f32 %v284_v19, %v273_v30  ;;  %v164_v36 = vadd.f32 %v162_v27, %v130_v28  ;;  %v264_v49 = vrot.slane %v257_v22, %v889_v12  ;;  %s1095_s18 = sld [smem:[#allocation5 + $0x7]]  ;;  %p770_p12 = scmp.ne.s32.totalorder %s594_s9, %s769_s12 }
  0xd5   :  { %v391_v11 = vstv %s973_s0  ;;  %v1024_v18 = vmul.f32 %v383_v1, %v875_v3  ;;  %v1027_v19 = vmul.f32 %v409_v2, %v875_v3  ;;  %v1036_v22 = vmul.f32 %v387_v8, %v880_v5  ;;  %s1070_s0 = sld [smem:[#allocation4 + $0xf]]  ;;  %p774_p13 = scmp.lt.s32.totalorder %s594_s9, %s594_s9 }
  0xd6   :  { %v291_v38 = vcombine.low %v287_v31, %v288_v32  ;;  %v304_v39 = vpop.permute.xlu1 %303  ;;  %v302_v40 = vpop.permute.xlu0 %301  ;;  %v198_v23 = vadd.f32 %v196_v35, %v164_v36  ;;  %v1040_v26 = vmul.f32 %v413_v9, %v880_v5  ;;  %v1043_v27 = vmul.f32 %v435_v10, %v875_v3  ;;  %p775_p0 = scmp.lt.s32.totalorder %s769_s12, %s769_s12 }
  0xd7   :  { %v306_v42 = vsel %vm305_vm6, %v302_v40, %v304_v39  ;;  %v307_v43 = vsel %vm305_vm6, %v304_v39, %v302_v40  ;;  %v1050_v29 = vmul.f32 %v391_v11, %v877_v4  ;;  %v1053_v30 = vmul.f32 %v417_v16, %v877_v4 }
  0xd8   :  { %v321_v44 = vmul.f32 %v314_v33, %v306_v42  ;;  %v322_v45 = vmul.f32 %v318_v34, %v307_v43  ;;  %v232_v48 = vadd.f32 %v230_v41, %v198_v23  ;;  %v298_v54 = vrot.slane %v291_v38, %v889_v12  ;;  %p776_p1 = por %p775_p0, %p774_p13 }
  0xd9   :  { %v421_v31 = vstv %s985_s20  ;;  %v1057_v32 = vmul.f32 %v439_v17, %v880_v5  ;;  %v1064_v34 = vmul.f32 %v443_v21, %v877_v4  ;;  %v447_v35 = vstv %s987_s21 }
  0xda   :  { %v325_v50 = vcombine.low %v321_v44, %v322_v45  ;;  %v338_v51 = vpop.permute.xlu1 %337  ;;  %v336_v52 = vpop.permute.xlu0 %335  ;;  %v266_v53 = vadd.f32 %v264_v49, %v232_v48  ;;  %v458_v36 = vstv %s983_s19  ;;  %v1073_v37 = vmul.f32 %v395_v25, %v885_v7  ;;  %p777_p2 = pnand %p776_p1, %p770_p12 }
  0xdb   :  { %v340_v55 = vsel %vm339_vm7, %v336_v52, %v338_v51  ;;  %v341_v56 = vsel %vm339_vm7, %v338_v51, %v336_v52  ;;  %v461_v38 = vstv %s989_s22  ;;  %v465_v39 = vstv %s991_s23 }
  0xdc   :  { %v332_v57 = vrot.slane %v325_v50, %v889_v12  ;;  %v355_v14 = vmul.f32 %v348_v46, %v340_v55  ;;  %v356_v58 = vmul.f32 %v352_v47, %v341_v56  ;;  %v300_v15 = vadd.f32 %v298_v54, %v266_v53 }
  0xdd   :  { %v469_v40 = vstv %s993_s24  ;;  %v1083_v41 = vmul.f32 %v421_v31, %v885_v7  ;;  %v473_v23 = vstv %s995_s3  ;;  %v487_v42 = vstv %s999_s4 }
  0xde   :  { %v359_v59 = vcombine.low %v355_v14, %v356_v58  ;;  %v334_v60 = vadd.f32 %v332_v57, %v300_v15  ;;  %v1090_v43 = vmul.f32 %v447_v35, %v885_v7  ;;  %v491_v44 = vstv %s1003_s26 }
  0xdf   :  { %v495_v45 = vstv %s1005_s1  ;;  %v499_v46 = vstv %s1011_s2  ;;  %v462_v47 = vmul.f32 %v461_v38, %v875_v3  ;;  %v466_v48 = vmul.f32 %v465_v39, %v880_v5 }
  0xe0   :  { %v366_v61 = vrot.slane %v359_v59, %v889_v12  ;;  %v470_v49 = vmul.f32 %v469_v40, %v877_v4  ;;  %v513_v50 = vstv %s1019_s28  ;;  %v1102_v51 = vmul.f32 %v473_v23, %v885_v7 }
  0xe1   :  { %v484_v52 = vstv %s997_s25  ;;  %v488_v53 = vmul.f32 %v487_v42, %v875_v3  ;;  %v517_v54 = vstv %s1021_s29  ;;  %v492_v55 = vmul.f32 %v491_v44, %v880_v5 }
  0xe2   :  { %v368_v62 = vadd.f32 %v366_v61, %v334_v60  ;;  %v496_v56 = vmul.f32 %v495_v45, %v877_v4  ;;  %v1110_v57 = vmul.f32 %v499_v46, %v885_v7  ;;  %v510_v14 = vstv %s1013_s27 }
  0xe3   :  { %v514_v58 = vmul.f32 %v513_v50, %v875_v3  ;;  %v521_v15 = vstv %s1031_s30  ;;  %v525_v59 = vstv %s1033_s6  ;;  %v539_v60 = vstv %s1045_s8 }
  0xe4   :  { %v369_v0 = vmax.f32 %v368_v62, 0.0  ;;  %v518_v61 = vmul.f32 %v517_v54, %v880_v5  ;;  %v543_v62 = vstv %s1047_s10  ;;  %v573_v1 = vstv %s1078_s15 }
  0xe5   :  { %v577_v2 = vstv %s1080_s16  ;;  %v522_v8 = vmul.f32 %v521_v15, %v877_v4  ;;  %v526_v9 = vmul.f32 %v525_v59, %v885_v7  ;;  %v536_v10 = vstv %s1087_s17 }
  0xe6   :  { %v372_v24 = vmul.f32 %v371_v63, %v369_v0  ;;  %v547_v63 = vstv %s1059_s11  ;;  %v551_v0 = vstv %s1061_s13  ;;  %v540_v11 = vmul.f32 %v539_v60, %v875_v3 }
  0xe7   :  { %v544_v16 = vmul.f32 %v543_v62, %v880_v5  ;;  %v548_v17 = vmul.f32 %v547_v63, %v877_v4  ;;  %v552_v21 = vmul.f32 %v551_v0, %v885_v7  ;;  %v562_v25 = vstv %s1095_s18 }
  0xe8   :  { %v603_v12 = vmul.f32 -1.442695, %v372_v24  ;;  %v565_v24 = vstv %s1068_s14  ;;  %v574_v35 = vmul.f32 %v573_v1, %v877_v4  ;;  %v578_v38 = vmul.f32 %v577_v2, %v885_v7 }
  0xe9   :  { %v566_v31 = vmul.f32 %v565_v24, %v875_v3 }
  0xea   :  { %665 = vpow2.f32 %v603_v12  ;;  %v569_v12 = vstv %s1070_s0 }
  0xf4   :  { %v666_v28 = vpop.eup %665 }
  0xf5   :  { %v376_v33 = vadd.f32 1.0, %v666_v28 }
  0xf7   :  { %667 = vrcp.f32 %v376_v33  ;;  %v570_v33 = vmul.f32 %v569_v12, %v880_v5 }
 0x101   :  { %v668_v28 = vpop.eup %667 }
 0x102   :  { %v381_v39 = vmul.f32 %v668_v28, %v380_v6  ;;  %v407_v40 = vmul.f32 %v668_v28, %v406_v13  ;;  %v433_v23 = vmul.f32 %v668_v28, %v432_v20  ;;  %v459_v42 = vmul.f32 %v668_v28, %v458_v36 }
 0x103   :  { %v485_v44 = vmul.f32 %v668_v28, %v484_v52  ;;  %v511_v45 = vmul.f32 %v668_v28, %v510_v14  ;;  %v537_v46 = vmul.f32 %v668_v28, %v536_v10  ;;  %v563_v50 = vmul.f32 %v668_v28, %v562_v25 }
 0x104   :  { %v385_v54 = vadd.f32 %v1024_v18, %v381_v39  ;;  %v411_v3 = vadd.f32 %v1027_v19, %v407_v40  ;;  %v437_v5 = vadd.f32 %v1043_v27, %v433_v23  ;;  %v463_v4 = vadd.f32 %v462_v47, %v459_v42 }
 0x105   :  { %v489_v15 = vadd.f32 %v488_v53, %v485_v44  ;;  %v515_v7 = vadd.f32 %v514_v58, %v511_v45  ;;  %v541_v59 = vadd.f32 %v540_v11, %v537_v46  ;;  %v567_v6 = vadd.f32 %v566_v31, %v563_v50 }
 0x106   :  { %v389_v13 = vadd.f32 %v1036_v22, %v385_v54  ;;  %v415_v20 = vadd.f32 %v1040_v26, %v411_v3  ;;  %v441_v36 = vadd.f32 %v1057_v32, %v437_v5  ;;  %v467_v52 = vadd.f32 %v466_v48, %v463_v4 }
 0x107   :  { %v493_v14 = vadd.f32 %v492_v55, %v489_v15  ;;  %v519_v60 = vadd.f32 %v518_v61, %v515_v7  ;;  %v545_v62 = vadd.f32 %v544_v16, %v541_v59  ;;  %v571_v18 = vadd.f32 %v570_v33, %v567_v6 }
 0x108   :  { %v393_v19 = vadd.f32 %v1050_v29, %v389_v13  ;;  %v419_v27 = vadd.f32 %v1053_v30, %v415_v20  ;;  %v445_v47 = vadd.f32 %v1064_v34, %v441_v36  ;;  %v471_v53 = vadd.f32 %v470_v49, %v467_v52 }
 0x109   :  { %v497_v58 = vadd.f32 %v496_v56, %v493_v14  ;;  %v523_v63 = vadd.f32 %v522_v8, %v519_v60  ;;  %v549_v0 = vadd.f32 %v548_v17, %v545_v62  ;;  %v575_v22 = vadd.f32 %v574_v35, %v571_v18 }
 0x10a   :  { %v397_v26 = vadd.f32 %v1073_v37, %v393_v19  ;;  %v423_v32 = vadd.f32 %v1083_v41, %v419_v27  ;;  %v449_v48 = vadd.f32 %v1090_v43, %v445_v47  ;;  %v475_v55 = vadd.f32 %v1102_v51, %v471_v53 }
 0x10b   :  { %v501_v61 = vadd.f32 %v1110_v57, %v497_v58  ;;  %v527_v29 = vadd.f32 %v526_v9, %v523_v63  ;;  %v553_v34 = vadd.f32 %v552_v21, %v549_v0  ;;  %v579_v56 = vadd.f32 %v578_v38, %v575_v22 }
 0x10c   :  { %v607_v24 = vmul.f32 -1.442695, %v397_v26  ;;  %v613_v30 = vmul.f32 -1.442695, %v423_v32  ;;  %v619_v12 = vmul.f32 -1.442695, %v449_v48 }
 0x10d   :  { %v625_v49 = vmul.f32 -1.442695, %v475_v55  ;;  %v631_v1 = vmul.f32 -1.442695, %v501_v61  ;;  %v637_v2 = vmul.f32 -1.442695, %v527_v29 }
 0x10e   :  { %669 = vpow2.f32 %v607_v24  ;;  %v643_v37 = vmul.f32 -1.442695, %v553_v34  ;;  %v649_v41 = vmul.f32 -1.442695, %v579_v56 }
 0x10f   :  { %671 = vpow2.f32 %v613_v30 }
 0x110   :  { %673 = vpow2.f32 %v619_v12 }
 0x111   :  { %675 = vpow2.f32 %v625_v49 }
 0x112   :  { %677 = vpow2.f32 %v631_v1 }
 0x113   :  { %679 = vpow2.f32 %v637_v2 }
 0x114   :  { %681 = vpow2.f32 %v643_v37 }
 0x115   :  { %683 = vpow2.f32 %v649_v41 }
 0x118   :  { %v670_v43 = vpop.eup %669 }
 0x119   :  { %v672_v51 = vpop.eup %671  ;;  %v401_v57 = vadd.f32 1.0, %v670_v43 }
 0x11a   :  { %v674_v8 = vpop.eup %673  ;;  %v427_v9 = vadd.f32 1.0, %v672_v51 }
 0x11b   :  { %v676_v10 = vpop.eup %675  ;;  %685 = vrcp.f32 %v401_v57  ;;  %v453_v11 = vadd.f32 1.0, %v674_v8 }
 0x11c   :  { %v678_v16 = vpop.eup %677  ;;  %687 = vrcp.f32 %v427_v9  ;;  %v479_v17 = vadd.f32 1.0, %v676_v10 }
 0x11d   :  { %v680_v21 = vpop.eup %679  ;;  %689 = vrcp.f32 %v453_v11  ;;  %v505_v25 = vadd.f32 1.0, %v678_v16 }
 0x11e   :  { %v682_v28 = vpop.eup %681  ;;  %691 = vrcp.f32 %v479_v17  ;;  %v531_v31 = vadd.f32 1.0, %v680_v21 }
 0x11f   :  { %v684_v33 = vpop.eup %683  ;;  %693 = vrcp.f32 %v505_v25  ;;  %v557_v35 = vadd.f32 1.0, %v682_v28 }
 0x120   :  { %695 = vrcp.f32 %v531_v31  ;;  %v583_v38 = vadd.f32 1.0, %v684_v33 }
 0x121   :  { %697 = vrcp.f32 %v557_v35 }
 0x122   :  { %699 = vrcp.f32 %v583_v38 }
 0x125   :  { %v686_v39 = vpop.eup %685 }
 0x126   :  { %v688_v40 = vpop.eup %687  ;;  %404 = vst [vmem:[#allocation11] sm:$0xf] %v686_v39 }
 0x127   :  { %v690_v23 = vpop.eup %689  ;;  %430 = vst [vmem:[#allocation11 + $0x4] sm:$0xf] %v688_v40 }
 0x128   :  { %v692_v42 = vpop.eup %691  ;;  %456 = vst [vmem:[#allocation11 + $0x8] sm:$0xf] %v690_v23 }
 0x129   :  { %v694_v44 = vpop.eup %693  ;;  %482 = vst [vmem:[#allocation11 + $0xc] sm:$0xf] %v692_v42 }
 0x12a   :  { %v696_v45 = vpop.eup %695  ;;  %508 = vst [vmem:[#allocation11 + $0x10] sm:$0xf] %v694_v44 }
 0x12b   :  { %v698_v46 = vpop.eup %697  ;;  %534 = vst [vmem:[#allocation11 + $0x14] sm:$0xf] %v696_v45 }
 0x12c   :  { %v700_v50 = vpop.eup %699  ;;  %560 = vst [vmem:[#allocation11 + $0x18] sm:$0xf] %v698_v46 }
 0x12d   :  { %586 = vst [vmem:[#allocation11 + $0x1c] sm:$0xf] %v700_v50 }
 0x12e   :  { %780 = shalt.err (!%p777_p2)
}
 0x12f   :  { %s781_s21 = scalar_lea.hbm %s1173_s5, 512 }
 0x130   :  { %p782_p3 = scmp.ne.s32.totalorder %s1173_s5, %s781_s21  ;;  %p785_p4 = scmp.lt.u32.totalorder %s781_s21, %s1173_s5 }
 0x132   :  { %p787_p5 = pnand %p785_p4, %p782_p3 }
 0x134   :  { %790 = shalt.err (!%p787_p5)
}
 0x135   :  { %596 = dma.vmem_to_hbm [thread:$0]  %s594_s9, 512, %s1173_s5, [#allocation8]  }
 0x136   :  { %797 = dma.done.wait [#allocation8], 512  }
 0x137   :  { %798 = vsyncadd [#allocation8], 4294966784 }
 0x138   :  { %600 = vsyncpa [#allocation7], 1 }
 0x139   :  { %601 = vsyncpa [#allocation10], 1 }
 0x13a   :  { %602 = vsyncpa [#allocation8], 1 }

</bundles_post_ra>
